<compile_context>
chip_gen: v6e
topology: v6e:2x2x1
jax: 0.10.0
libtpu: 0.0.40
codegen_flags: <defaults>
</compile_context>

<pallas_src>
import functools

import jax
import jax.numpy as jnp
from jax.experimental import pallas as pl
from jax.experimental.pallas import tpu as pltpu


def _round_up(n, m):
    return ((n + m - 1) // m) * m


def _default_fuse_fc():
    """Fuse the FC head into the recurrent RHS only on chips with a 256-wide MXU."""
    try:
        kind = jax.devices()[0].device_kind.lower()
    except Exception:
        return True
    # v2-v5 MXU tiles are 128 wide: a 256-wide RHS would need two weight loads per
    # serial step. v6e / v7x MXUs are 256 wide, so the fused RHS is free per step.
    return not any(v in kind for v in ("v2", "v3", "v4", "v5"))


def _rnn_kernel(x_ref, w_ih_t_ref, b_rnn_ref, rhs_ref, b_fc_ref, out_ref, *,
                hp, fuse_fc, compute_dtype):
    """Whole-problem-resident kernel (no grid): ~120 KB of VMEM.

    x_ref:      (T, BP, D)   time-major input, batch padded to 8 sublanes (f32)
    w_ih_t_ref: (D, HP)      W_ih^T, zero-padded to HP lanes (f32)
    b_rnn_ref:  (1, HP)      b_ih + b_hh, zero-padded (f32)
    rhs_ref:    (HP, HP+FP)  [W_hh^T | W_fc^T], zero-padded, stored in compute dtype
    b_fc_ref:   (1, FP)      zero-padded (f32)
    out_ref:    (BP, FP)     lane/sublane-dense padded output (f32)
    """
    T, BP, D = x_ref.shape
    HP = hp
    FP = out_ref.shape[1]

    b_rnn = b_rnn_ref[...]

    # Input projection (+ both biases) has no serial dependence on h: precompute it
    # entirely off the recurrent critical path.
    x = x_ref[...]
    if D == 1:
        # K=1 "matmul" is an outer product: VPU broadcast-multiply, never the MXU.
        xp = x * w_ih_t_ref[...] + b_rnn                             # (T, BP, HP)
    else:
        xp = (jnp.dot(x.reshape(T * BP, D), w_ih_t_ref[...],
                      preferred_element_type=jnp.float32)
              + b_rnn).reshape(T, BP, HP)

    # Recurrent matmuls: deliberate bf16 cast with f32 accumulation by default; the
    # f32 mode keeps default precision, matching the pure-JAX reference exactly.
    if jnp.dtype(compute_dtype) == jnp.dtype(jnp.float32):
        mm = lambda a, b: jnp.dot(a, b, preferred_element_type=jnp.float32)
    else:
        mm = lambda a, b: jnp.dot(a.astype(compute_dtype), b,
                                  preferred_element_type=jnp.float32)

    # TODO(synk): if the bundle dump shows Mosaic re-pushing the loop-invariant RHS
    # into the MXU every step, switch to pltpu.matmul_push_rhs (once, before the
    # loop) + pltpu.matmul_acc_lhs per step + pltpu.matmul_pop.
    if fuse_fc:
        # v6e/v7x: one 256-wide dot per step against [W_hh^T | W_fc^T]; lanes [:HP]
        # feed the recurrence, and the final dot's lanes [HP:] are the FC head.
        rhs = rhs_ref[...]
        h = jnp.tanh(xp[0])                      # h_0 == 0 -> first dot skipped
        for t in range(1, T):
            z = mm(h, rhs)                       # (BP, HP + FP)
            h = jnp.tanh(xp[t] + z[:, :HP])
        z = mm(h, rhs)
        out_ref[...] = z[:, HP:HP + FP] + b_fc_ref[...]
    else:
        # v5e: keep each serial dot at 128 lanes (one MXU tile). h_0 == 0 still
        # gives T (not T+1) dependent matmuls.
        w_hh_t = rhs_ref[:, :HP]
        w_fc_t = rhs_ref[:, HP:HP + FP]
        h = jnp.tanh(xp[0])
        for t in range(1, T):
            h = jnp.tanh(xp[t] + mm(h, w_hh_t))
        out_ref[...] = mm(h, w_fc_t) + b_fc_ref[...]


def prepare_params(params, *, compute_dtype=jnp.bfloat16, lane=128):
    """One-time padding / packing of the PyTorch-layout weights.

    Hoisted out of the per-call forward path (perf feedback): call once, reuse the
    returned (prepared, meta) for every forward call.
    """
    w_ih, w_hh, b_ih, b_hh, w_fc, b_fc = params
    H, D = w_ih.shape
    F = w_fc.shape[0]
    HP = _round_up(H, lane)
    FP = _round_up(F, lane)

    w_ih_t = jnp.zeros((D, HP), jnp.float32).at[:, :H].set(
        w_ih.T.astype(jnp.float32))
    b_rnn = jnp.zeros((1, HP), jnp.float32).at[0, :H].set(
        (b_ih + b_hh).astype(jnp.float32))
    rhs = (jnp.zeros((HP, HP + FP), jnp.float32)
           .at[:H, :H].set(w_hh.T.astype(jnp.float32))
           .at[:H, HP:HP + F].set(w_fc.T.astype(jnp.float32))
           .astype(compute_dtype))
    b_fc_p = jnp.zeros((1, FP), jnp.float32).at[0, :F].set(
        b_fc.astype(jnp.float32))

    prepared = (w_ih_t, b_rnn, rhs, b_fc_p)
    meta = dict(D=D, H=H, F=F, HP=HP, FP=FP, compute_dtype=compute_dtype)
    return prepared, meta


def simple_rnn_forward(x, prepared, meta, *, fuse_fc=None):
    """x: (B, T, D) float32. Returns (B, future_steps) float32."""
    w_ih_t, b_rnn, rhs, b_fc_p = prepared
    B, T, D = x.shape
    assert D == meta["D"]
    HP, FP, F = meta["HP"], meta["FP"], meta["F"]
    if fuse_fc is None:
        fuse_fc = _default_fuse_fc()

    # Pad batch to a full 8-sublane vreg so h / xp / out are unmasked full tiles.
    BP = _round_up(B, 8)
    x_tm = jnp.transpose(x.astype(jnp.float32), (1, 0, 2))           # (T, B, D)
    if BP != B:
        x_tm = jnp.zeros((T, BP, D), jnp.float32).at[:, :B, :].set(x_tm)

    kernel = functools.partial(_rnn_kernel, hp=HP, fuse_fc=fuse_fc,
                               compute_dtype=meta["compute_dtype"])
    out_p = pl.pallas_call(
        kernel,
        out_shape=jax.ShapeDtypeStruct((BP, FP), jnp.float32),
        compiler_params=pltpu.CompilerParams(
            vmem_limit_bytes=32 * 1024 * 1024),
    )(x_tm, w_ih_t, b_rnn, rhs, b_fc_p)

    # TODO(synk): for large B add grid=(pl.cdiv(B, TB),) with
    # dimension_semantics=("parallel",) so v7x's two TensorCores split the batch,
    # re-deriving TB against v7x's 64 MiB VMEM; at B=2 a grid is pure overhead.
    return out_p[:B, :F]


def init_params(key, input_dim, hidden_dim, future_steps):
    """Deterministic init mirroring PyTorch shapes (uniform(-1/sqrt(H), 1/sqrt(H)))."""
    ks = jax.random.split(key, 6)
    bound = 1.0 / jnp.sqrt(hidden_dim)
    u = lambda k, shape: jax.random.uniform(k, shape, jnp.float32, -bound, bound)
    w_ih = u(ks[0], (hidden_dim, input_dim))      # weight_ih_l0
    w_hh = u(ks[1], (hidden_dim, hidden_dim))     # weight_hh_l0
    b_ih = u(ks[2], (hidden_dim,))                # bias_ih_l0
    b_hh = u(ks[3], (hidden_dim,))                # bias_hh_l0
    w_fc = u(ks[4], (future_steps, hidden_dim))   # fc.weight
    b_fc = u(ks[5], (future_steps,))              # fc.bias
    return (w_ih, w_hh, b_ih, b_hh, w_fc, b_fc)


def reference_forward(x, params):
    """Pure-JAX reference matching PyTorch nn.RNN semantics (f32)."""
    w_ih, w_hh, b_ih, b_hh, w_fc, b_fc = params
    B, T, _ = x.shape
    H = w_hh.shape[0]
    h = jnp.zeros((B, H), jnp.float32)
    for t in range(T):
        h = jnp.tanh(x[:, t, :] @ w_ih.T + b_ih + h @ w_hh.T + b_hh)
    return h @ w_fc.T + b_fc


if __name__ == "__main__":
    input_dim = 1
    rnn_output_dim = 32
    future_steps = 10
    B, T = 2, 8

    key = jax.random.PRNGKey(0)
    k_x, k_p = jax.random.split(key)
    x = jax.random.normal(k_x, (B, T, input_dim), jnp.float32)
    params = init_params(k_p, input_dim, rnn_output_dim, future_steps)
    ref = reference_forward(x, params)

    # Primary (perf) path: bf16 recurrent matmuls, FC head fused on 256-wide MXUs.
    prep_bf16, meta_bf16 = prepare_params(params, compute_dtype=jnp.bfloat16)
    fwd = jax.jit(lambda xx: simple_rnn_forward(xx, prep_bf16, meta_bf16))
    out = jax.block_until_ready(fwd(x))
    assert out.shape == (B, future_steps)
    # Tolerance relaxed intentionally for the deliberate bf16 recurrence.
    assert jnp.allclose(out, ref, atol=5e-2, rtol=1e-2), "bf16 path mismatch"

    # Exercise the non-default fusion branch too (compiles/runs on any generation).
    out_alt = jax.block_until_ready(
        simple_rnn_forward(x, prep_bf16, meta_bf16,
                           fuse_fc=not _default_fuse_fc()))
    assert jnp.allclose(out_alt, ref, atol=5e-2, rtol=1e-2), "alt-fusion mismatch"

    # Exact mode: f32 recurrence, tight tolerance vs the pure-JAX reference.
    prep_f32, meta_f32 = prepare_params(params, compute_dtype=jnp.float32)
    out_f32 = jax.block_until_ready(simple_rnn_forward(x, prep_f32, meta_f32))
    assert jnp.allclose(out_f32, ref, atol=1e-4, rtol=1e-4), "f32 path mismatch"

    print("KERNEL_OK")
</pallas_src>

<mosaic_0001>
module attributes {stable_mosaic.version = 11 : i64} {
  func.func @_rnn_kernel(%arg0: memref<8x8x1xf32, #tpu.memory_space<vmem>>, %arg1: memref<1x128xf32, #tpu.memory_space<vmem>>, %arg2: memref<1x128xf32, #tpu.memory_space<vmem>>, %arg3: memref<128x256xbf16, #tpu.memory_space<vmem>>, %arg4: memref<1x128xf32, #tpu.memory_space<vmem>>, %arg5: memref<8x128xf32, #tpu.memory_space<vmem>>) attributes {dimension_semantics = [], scalar_prefetch = 0 : i64, scratch_operands = 0 : i64, tpu.core_type = #tpu.core_type<tc>} {
    %c0 = arith.constant 0 : index
    %c0_0 = arith.constant 0 : index
    %0 = vector.load %arg2[%c0, %c0_0] : memref<1x128xf32, #tpu.memory_space<vmem>>, vector<1x128xf32>
    %c0_1 = arith.constant 0 : index
    %c0_2 = arith.constant 0 : index
    %c0_3 = arith.constant 0 : index
    %1 = vector.load %arg0[%c0_1, %c0_2, %c0_3] : memref<8x8x1xf32, #tpu.memory_space<vmem>>, vector<8x8x1xf32>
    %c0_4 = arith.constant 0 : index
    %c0_5 = arith.constant 0 : index
    %2 = vector.load %arg1[%c0_4, %c0_5] : memref<1x128xf32, #tpu.memory_space<vmem>>, vector<1x128xf32>
    %3 = vector.shape_cast %2 : vector<1x128xf32> to vector<1x1x128xf32>
    %4 = vector.broadcast %1 : vector<8x8x1xf32> to vector<8x8x128xf32>
    %5 = vector.broadcast %3 : vector<1x1x128xf32> to vector<8x8x128xf32>
    %6 = arith.mulf %4, %5 : vector<8x8x128xf32>
    %7 = vector.shape_cast %0 : vector<1x128xf32> to vector<1x1x128xf32>
    %8 = vector.broadcast %7 : vector<1x1x128xf32> to vector<8x8x128xf32>
    %9 = arith.addf %6, %8 : vector<8x8x128xf32>
    %c0_6 = arith.constant 0 : index
    %c0_7 = arith.constant 0 : index
    %10 = vector.load %arg3[%c0_6, %c0_7] : memref<128x256xbf16, #tpu.memory_space<vmem>>, vector<128x256xbf16>
    %11 = vector.extract_strided_slice %9 {offsets = [0, 0, 0], sizes = [1, 8, 128], strides = [1, 1, 1]} : vector<8x8x128xf32> to vector<1x8x128xf32>
    %12 = vector.shape_cast %11 : vector<1x8x128xf32> to vector<8x128xf32>
    %13 = math.tanh %12 : vector<8x128xf32>
    %14 = arith.truncf %13 : vector<8x128xf32> to vector<8x128xbf16>
    %cst = arith.constant dense<0.000000e+00> : vector<8x256xf32>
    %15 = tpu.matmul %14, %10, %cst {dimension_numbers = #tpu.dot_dimension_numbers<[1], [0], [0], [1], [0, 0, 1, 1], [], []>} : vector<8x128xbf16>, vector<128x256xbf16>, vector<8x256xf32> -> vector<8x256xf32>
    %16 = vector.extract_strided_slice %9 {offsets = [1, 0, 0], sizes = [1, 8, 128], strides = [1, 1, 1]} : vector<8x8x128xf32> to vector<1x8x128xf32>
    %17 = vector.shape_cast %16 : vector<1x8x128xf32> to vector<8x128xf32>
    %18 = vector.extract_strided_slice %15 {offsets = [0, 0], sizes = [8, 128], strides = [1, 1]} : vector<8x256xf32> to vector<8x128xf32>
    %19 = arith.addf %17, %18 : vector<8x128xf32>
    %20 = math.tanh %19 : vector<8x128xf32>
    %21 = arith.truncf %20 : vector<8x128xf32> to vector<8x128xbf16>
    %cst_8 = arith.constant dense<0.000000e+00> : vector<8x256xf32>
    %22 = tpu.matmul %21, %10, %cst_8 {dimension_numbers = #tpu.dot_dimension_numbers<[1], [0], [0], [1], [0, 0, 1, 1], [], []>} : vector<8x128xbf16>, vector<128x256xbf16>, vector<8x256xf32> -> vector<8x256xf32>
    %23 = vector.extract_strided_slice %9 {offsets = [2, 0, 0], sizes = [1, 8, 128], strides = [1, 1, 1]} : vector<8x8x128xf32> to vector<1x8x128xf32>
    %24 = vector.shape_cast %23 : vector<1x8x128xf32> to vector<8x128xf32>
    %25 = vector.extract_strided_slice %22 {offsets = [0, 0], sizes = [8, 128], strides = [1, 1]} : vector<8x256xf32> to vector<8x128xf32>
    %26 = arith.addf %24, %25 : vector<8x128xf32>
    %27 = math.tanh %26 : vector<8x128xf32>
    %28 = arith.truncf %27 : vector<8x128xf32> to vector<8x128xbf16>
    %cst_9 = arith.constant dense<0.000000e+00> : vector<8x256xf32>
    %29 = tpu.matmul %28, %10, %cst_9 {dimension_numbers = #tpu.dot_dimension_numbers<[1], [0], [0], [1], [0, 0, 1, 1], [], []>} : vector<8x128xbf16>, vector<128x256xbf16>, vector<8x256xf32> -> vector<8x256xf32>
    %30 = vector.extract_strided_slice %9 {offsets = [3, 0, 0], sizes = [1, 8, 128], strides = [1, 1, 1]} : vector<8x8x128xf32> to vector<1x8x128xf32>
    %31 = vector.shape_cast %30 : vector<1x8x128xf32> to vector<8x128xf32>
    %32 = vector.extract_strided_slice %29 {offsets = [0, 0], sizes = [8, 128], strides = [1, 1]} : vector<8x256xf32> to vector<8x128xf32>
    %33 = arith.addf %31, %32 : vector<8x128xf32>
    %34 = math.tanh %33 : vector<8x128xf32>
    %35 = arith.truncf %34 : vector<8x128xf32> to vector<8x128xbf16>
    %cst_10 = arith.constant dense<0.000000e+00> : vector<8x256xf32>
    %36 = tpu.matmul %35, %10, %cst_10 {dimension_numbers = #tpu.dot_dimension_numbers<[1], [0], [0], [1], [0, 0, 1, 1], [], []>} : vector<8x128xbf16>, vector<128x256xbf16>, vector<8x256xf32> -> vector<8x256xf32>
    %37 = vector.extract_strided_slice %9 {offsets = [4, 0, 0], sizes = [1, 8, 128], strides = [1, 1, 1]} : vector<8x8x128xf32> to vector<1x8x128xf32>
    %38 = vector.shape_cast %37 : vector<1x8x128xf32> to vector<8x128xf32>
    %39 = vector.extract_strided_slice %36 {offsets = [0, 0], sizes = [8, 128], strides = [1, 1]} : vector<8x256xf32> to vector<8x128xf32>
    %40 = arith.addf %38, %39 : vector<8x128xf32>
    %41 = math.tanh %40 : vector<8x128xf32>
    %42 = arith.truncf %41 : vector<8x128xf32> to vector<8x128xbf16>
    %cst_11 = arith.constant dense<0.000000e+00> : vector<8x256xf32>
    %43 = tpu.matmul %42, %10, %cst_11 {dimension_numbers = #tpu.dot_dimension_numbers<[1], [0], [0], [1], [0, 0, 1, 1], [], []>} : vector<8x128xbf16>, vector<128x256xbf16>, vector<8x256xf32> -> vector<8x256xf32>
    %44 = vector.extract_strided_slice %9 {offsets = [5, 0, 0], sizes = [1, 8, 128], strides = [1, 1, 1]} : vector<8x8x128xf32> to vector<1x8x128xf32>
    %45 = vector.shape_cast %44 : vector<1x8x128xf32> to vector<8x128xf32>
    %46 = vector.extract_strided_slice %43 {offsets = [0, 0], sizes = [8, 128], strides = [1, 1]} : vector<8x256xf32> to vector<8x128xf32>
    %47 = arith.addf %45, %46 : vector<8x128xf32>
    %48 = math.tanh %47 : vector<8x128xf32>
    %49 = arith.truncf %48 : vector<8x128xf32> to vector<8x128xbf16>
    %cst_12 = arith.constant dense<0.000000e+00> : vector<8x256xf32>
    %50 = tpu.matmul %49, %10, %cst_12 {dimension_numbers = #tpu.dot_dimension_numbers<[1], [0], [0], [1], [0, 0, 1, 1], [], []>} : vector<8x128xbf16>, vector<128x256xbf16>, vector<8x256xf32> -> vector<8x256xf32>
    %51 = vector.extract_strided_slice %9 {offsets = [6, 0, 0], sizes = [1, 8, 128], strides = [1, 1, 1]} : vector<8x8x128xf32> to vector<1x8x128xf32>
    %52 = vector.shape_cast %51 : vector<1x8x128xf32> to vector<8x128xf32>
    %53 = vector.extract_strided_slice %50 {offsets = [0, 0], sizes = [8, 128], strides = [1, 1]} : vector<8x256xf32> to vector<8x128xf32>
    %54 = arith.addf %52, %53 : vector<8x128xf32>
    %55 = math.tanh %54 : vector<8x128xf32>
    %56 = arith.truncf %55 : vector<8x128xf32> to vector<8x128xbf16>
    %cst_13 = arith.constant dense<0.000000e+00> : vector<8x256xf32>
    %57 = tpu.matmul %56, %10, %cst_13 {dimension_numbers = #tpu.dot_dimension_numbers<[1], [0], [0], [1], [0, 0, 1, 1], [], []>} : vector<8x128xbf16>, vector<128x256xbf16>, vector<8x256xf32> -> vector<8x256xf32>
    %58 = vector.extract_strided_slice %9 {offsets = [7, 0, 0], sizes = [1, 8, 128], strides = [1, 1, 1]} : vector<8x8x128xf32> to vector<1x8x128xf32>
    %59 = vector.shape_cast %58 : vector<1x8x128xf32> to vector<8x128xf32>
    %60 = vector.extract_strided_slice %57 {offsets = [0, 0], sizes = [8, 128], strides = [1, 1]} : vector<8x256xf32> to vector<8x128xf32>
    %61 = arith.addf %59, %60 : vector<8x128xf32>
    %62 = math.tanh %61 : vector<8x128xf32>
    %63 = arith.truncf %62 : vector<8x128xf32> to vector<8x128xbf16>
    %cst_14 = arith.constant dense<0.000000e+00> : vector<8x256xf32>
    %64 = tpu.matmul %63, %10, %cst_14 {dimension_numbers = #tpu.dot_dimension_numbers<[1], [0], [0], [1], [0, 0, 1, 1], [], []>} : vector<8x128xbf16>, vector<128x256xbf16>, vector<8x256xf32> -> vector<8x256xf32>
    %65 = vector.extract_strided_slice %64 {offsets = [0, 128], sizes = [8, 128], strides = [1, 1]} : vector<8x256xf32> to vector<8x128xf32>
    %c0_15 = arith.constant 0 : index
    %c0_16 = arith.constant 0 : index
    %66 = vector.load %arg4[%c0_15, %c0_16] : memref<1x128xf32, #tpu.memory_space<vmem>>, vector<1x128xf32>
    %67 = vector.broadcast %66 : vector<1x128xf32> to vector<8x128xf32>
    %68 = arith.addf %65, %67 : vector<8x128xf32>
    %c0_17 = arith.constant 0 : index
    %c0_18 = arith.constant 0 : index
    %69 = vector.load %arg5[%c0_17, %c0_18] : memref<8x128xf32, #tpu.memory_space<vmem>>, vector<8x128xf32>
    tpu.vector_store %arg5[%c0_17, %c0_18], %68 {strides = array<i32>} : memref<8x128xf32, #tpu.memory_space<vmem>>, vector<8x128xf32>,
    return
  }
}

</mosaic_0001>

<bundles_post_ra>
// kernel: _lambda_.1
= control target key start
LH: loop header
LB: loop body
LE: loop exit
PB: predicated region body
PF: predicated region fallthrough
CT: control target
= control target key end

     0   :  { %10 = vsyncpa [#allocation3], 0  ;;  %s653_s18 = smov [#allocation2]   ;;  %s916_s0 = inlined_call_operand.vmem [shape: f32[8,8,1], index: 0, kind: input, shape index: {}]   ;;  %s917_s1 = inlined_call_operand.vmem [shape: f32[1,128], index: 1, kind: input, shape index: {}]   ;;  %s918_s2 = inlined_call_operand.vmem [shape: f32[1,128], index: 2, kind: input, shape index: {}]   ;;  %s919_s3 = inlined_call_operand.hbm [shape: bf16[128,256], index: 3, kind: input, shape index: {}]   ;;  %s920_s4 = inlined_call_operand.vmem [shape: f32[1,128], index: 4, kind: input, shape index: {}]   ;;  %s921_s5 = inlined_call_operand.vmem [shape: f32[8,128], index: 5, kind: output, shape index: {}]  }
   0x1   :  { %s22_s19 = sshll.u32 %s653_s18, 4  ;;  %s23_s19 = int_to_ptr.vmem [resolvable:$true] %s22_s19 }
   0x2   :  { %s639_s20 = scalar_lea.vmem %s23_s19, 2048  ;;  %p644_p1 = scmp.lt.s32.totalorder %s23_s19, %s23_s19 }
   0x3   :  { %p640_p0 = scmp.ne.s32.totalorder %s23_s19, %s639_s20  ;;  %p645_p2 = scmp.lt.s32.totalorder %s639_s20, %s639_s20 }
   0x5   :  { %p646_p3 = por %p645_p2, %p644_p1 }
   0x7   :  { %p647_p4 = pnand %p646_p3, %p640_p0 }
   0x9   :  { %650 = shalt.err (!%p647_p4)
}
   0xa   :  { %s654_s21 = smov 128   ;;  %s655_s22 = smov 8  }
   0xb   :  { %28 = dma.hbm_to_vmem [thread:$0]  %s919_s3, 2048, %s23_s19, [#allocation3], %s654_s21, %s654_s21, %s655_s22  }
   0xc   :  { %651 = dma.done.wait [#allocation3], 2048  }
   0xd   :  { %652 = vsyncadd [#allocation3], 4294965248  ;;  %v656_v0 = vmov 0   ;;  %v36_v1 = vld [vmem:[%s916_s0] sm:$0xff]  ;;  %v37_v2 = vld [vmem:[%s916_s0 + $0x8] sm:$0xff] }
   0xe   :  { %589 = vset.pattern.permute.xlu0 %v656_v0  ;;  %243 = vmatprep.mubr.bf16.mxu0 %v656_v0  ;;  %v700_v3 = vld [vmem:[#allocation2 + $0x74] ss:$8 sps:$4 sm:$0xff]   ;;  %v702_v4 = vld [vmem:[#allocation2 + $0x70] ss:$8 sps:$4 sm:$0xff]   ;;  %v704_v5 = vld [vmem:[#allocation2 + $0x64] ss:$8 sps:$4 sm:$0xff]  }
   0xf   :  { %286 = vmatprep.mubr.bf16.mxu1 %v656_v0  ;;  %590 = vset.pattern.permute.xlu1 %v656_v0  ;;  %v40_v6 = vld [vmem:[%s916_s0 + $0x20] sm:$0xff]  ;;  %v715_v8 = vld [vmem:[#allocation2 + $0x54] ss:$8 sps:$4 sm:$0xff]   ;;  %v723_v10 = vld [vmem:[#allocation2 + $0x50] ss:$8 sps:$4 sm:$0xff]  }
  0x10   :  { %47 = vperm.xlu0 %589, %v36_v1   ;;  %211 = vmatprep.subr.bf16.mxu0 %v700_v3  ;;  %v712_v7 = vld [vmem:[#allocation2 + $0x60] ss:$8 sps:$4 sm:$0xff]   ;;  %v42_v9 = vld [vmem:[%s916_s0 + $0x30] sm:$0xff]  ;;  %v726_v11 = vld [vmem:[#allocation2 + $0x44] ss:$8 sps:$4 sm:$0xff]  }
  0x11   :  { %254 = vmatprep.subr.bf16.mxu1 %v700_v3  ;;  %212 = vmatpush1.bf16.msra.mxu0 %v702_v4  ;;  %v731_v12 = vld [vmem:[#allocation2 + $0x40] ss:$8 sps:$4 sm:$0xff]   ;;  %v734_v13 = vld [vmem:[#allocation2 + $0x34] ss:$8 sps:$4 sm:$0xff]   ;;  %v739_v14 = vld [vmem:[#allocation2 + $0x30] ss:$8 sps:$4 sm:$0xff]  }
  0x12   :  { %213 = vmatprep.subr.bf16.mxu0 %v704_v5  ;;  %255 = vmatpush1.bf16.msra.mxu1 %v702_v4  ;;  %v742_v15 = vld [vmem:[#allocation2 + $0x24] ss:$8 sps:$4 sm:$0xff]   ;;  %v747_v16 = vld [vmem:[#allocation2 + $0x20] ss:$8 sps:$4 sm:$0xff]   ;;  %v750_v17 = vld [vmem:[#allocation2 + $0x14] ss:$8 sps:$4 sm:$0xff]  }
  0x13   :  { %256 = vmatprep.subr.bf16.mxu1 %v704_v5  ;;  %v755_v18 = vld [vmem:[#allocation2 + $0x10] ss:$8 sps:$4 sm:$0xff]   ;;  %v758_v19 = vld [vmem:[#allocation2 + $0x4] ss:$8 sps:$4 sm:$0xff]   ;;  %v763_v20 = vld [vmem:[#allocation2] ss:$8 sps:$4 sm:$0xff]  }
  0x14   :  { %52 = vperm.xlu0 %589, %v37_v2   ;;  %v775_v21 = vld [vmem:[%s917_s1] ss:$0 sm:$0xff]  ;;  %v38_v28 = vld [vmem:[%s916_s0 + $0x10] sm:$0xff]  ;;  %v39_v29 = vld [vmem:[%s916_s0 + $0x18] sm:$0xff] }
  0x15   :  { %214 = vmatpush1.bf16.msra.mxu0 %v712_v7  ;;  %v780_v23 = vld [vmem:[%s918_s2] ss:$0 sm:$0xff]  ;;  %57 = vperm.xlu1 %590, %v38_v28   ;;  %v41_v30 = vld [vmem:[%s916_s0 + $0x28] sm:$0xff]  ;;  %v43_v31 = vld [vmem:[%s916_s0 + $0x38] sm:$0xff] }
  0x16   :  { %215 = vmatprep.subr.bf16.mxu0 %v715_v8  ;;  %257 = vmatpush1.bf16.msra.mxu1 %v712_v7 }
  0x17   :  { %258 = vmatprep.subr.bf16.mxu1 %v715_v8 }
  0x18   :  { %67 = vperm.xlu0 %589, %v40_v6  }
  0x19   :  { %216 = vmatpush1.bf16.msra.mxu0 %v723_v10  ;;  %62 = vperm.xlu1 %590, %v39_v29  }
  0x1a   :  { %217 = vmatprep.subr.bf16.mxu0 %v726_v11  ;;  %259 = vmatpush1.bf16.msra.mxu1 %v723_v10 }
  0x1b   :  { %260 = vmatprep.subr.bf16.mxu1 %v726_v11 }
  0x1c   :  { %77 = vperm.xlu0 %589, %v42_v9  }
  0x1d   :  { %218 = vmatpush1.bf16.msra.mxu0 %v731_v12  ;;  %72 = vperm.xlu1 %590, %v41_v30  }
  0x1e   :  { %219 = vmatprep.subr.bf16.mxu0 %v734_v13  ;;  %261 = vmatpush1.bf16.msra.mxu1 %v731_v12 }
  0x1f   :  { %262 = vmatprep.subr.bf16.mxu1 %v734_v13 }
  0x21   :  { %220 = vmatpush1.bf16.msra.mxu0 %v739_v14  ;;  %82 = vperm.xlu1 %590, %v43_v31  }
  0x22   :  { %221 = vmatprep.subr.bf16.mxu0 %v742_v15  ;;  %263 = vmatpush1.bf16.msra.mxu1 %v739_v14 }
  0x23   :  { %264 = vmatprep.subr.bf16.mxu1 %v742_v15 }
  0x25   :  { %222 = vmatpush1.bf16.msra.mxu0 %v747_v16 }
  0x26   :  { %223 = vmatprep.subr.bf16.mxu0 %v750_v17  ;;  %265 = vmatpush1.bf16.msra.mxu1 %v747_v16 }
  0x27   :  { %266 = vmatprep.subr.bf16.mxu1 %v750_v17 }
  0x29   :  { %224 = vmatpush1.bf16.msra.mxu0 %v755_v18 }
  0x2a   :  { %225 = vmatprep.subr.bf16.mxu0 %v758_v19  ;;  %267 = vmatpush1.bf16.msra.mxu1 %v755_v18 }
  0x2b   :  { %268 = vmatprep.subr.bf16.mxu1 %v758_v19 }
  0x2d   :  { %226 = vmatpush1.bf16.msra.mxu0 %v763_v20 }
  0x2e   :  { %269 = vmatpush1.bf16.msra.mxu1 %v763_v20  ;;  %297 = vmatprep.subr.bf16.mxu0 %v700_v3 }
  0x2f   :  { %340 = vmatprep.subr.bf16.mxu1 %v700_v3 }
  0x8b   :  { %v48_v22 = vpop.permute.xlu0 %47 }
  0x8c   :  { %v91_v24 = vmul.f32 %v775_v21, %v48_v22 }
  0x8e   :  { %v105_v25 = vadd.f32 %v780_v23, %v91_v24 }
  0x8f   :  { %v53_v32 = vpop.permute.xlu0 %52 }
  0x90   :  { %615 = vtanh.f32 %v105_v25  ;;  %v92_v33 = vmul.f32 %v775_v21, %v53_v32  ;;  %v58_v42 = vpop.permute.xlu1 %57 }
  0x91   :  { %v93_v43 = vmul.f32 %v775_v21, %v58_v42 }
  0x92   :  { %v106_v34 = vadd.f32 %v780_v23, %v92_v33 }
  0x93   :  { %v107_v44 = vadd.f32 %v780_v23, %v93_v43  ;;  %v68_v62 = vpop.permute.xlu0 %67 }
  0x94   :  { %v63_v52 = vpop.permute.xlu1 %62  ;;  %v95_v63 = vmul.f32 %v775_v21, %v68_v62 }
  0x95   :  { %v94_v53 = vmul.f32 %v775_v21, %v63_v52 }
  0x96   :  { %v109_v1 = vadd.f32 %v780_v23, %v95_v63 }
  0x97   :  { %v108_v54 = vadd.f32 %v780_v23, %v94_v53 }
  0x9d   :  { %v616_v26 = vpop.eup %615 }
  0x9e   :  { %v130_v27 = vpack.c.bf16 %v616_v26, %v616_v26 }
  0xa0   :  { %244 = vmatmul.mubr.bf16.vlgmr.msra.gmra.mxu0 %v130_v27 }
  0xa1   :  { %298 = vmatpush1.bf16.msra.mxu0 %v702_v4  ;;  %329 = vmatprep.mubr.bf16.mxu0 %v656_v0 }
  0xa2   :  { %299 = vmatprep.subr.bf16.mxu0 %v704_v5 }
  0xa5   :  { %300 = vmatpush1.bf16.msra.mxu0 %v712_v7 }
  0xa6   :  { %301 = vmatprep.subr.bf16.mxu0 %v715_v8 }
  0xa9   :  { %302 = vmatpush1.bf16.msra.mxu0 %v723_v10 }
  0xaa   :  { %303 = vmatprep.subr.bf16.mxu0 %v726_v11 }
  0xad   :  { %304 = vmatpush1.bf16.msra.mxu0 %v731_v12 }
  0xae   :  { %305 = vmatprep.subr.bf16.mxu0 %v734_v13 }
  0xb1   :  { %306 = vmatpush1.bf16.msra.mxu0 %v739_v14 }
  0xb2   :  { %307 = vmatprep.subr.bf16.mxu0 %v742_v15 }
  0xb5   :  { %308 = vmatpush1.bf16.msra.mxu0 %v747_v16 }
  0xb6   :  { %309 = vmatprep.subr.bf16.mxu0 %v750_v17 }
  0xb9   :  { %310 = vmatpush1.bf16.msra.mxu0 %v755_v18 }
  0xba   :  { %311 = vmatprep.subr.bf16.mxu0 %v758_v19 }
  0xbd   :  { %312 = vmatpush1.bf16.msra.mxu0 %v763_v20 }
  0xbe   :  { %383 = vmatprep.subr.bf16.mxu0 %v700_v3 }
 0x160   :  { %v245_v35 = vpop.f32.mrf.mxu0 }
 0x161   :  { %v251_v36 = vadd.f32 %v245_v35, %v106_v34 }
 0x162   :  { %v247_v37 = vpop.f32.mrf.mxu0 }
 0x163   :  { %617 = vtanh.f32 %v251_v36 }
 0x164   :  { %v248_v38 = vpop.f32.mrf.mxu0 }
 0x166   :  { %v249_v39 = vpop.f32.mrf.mxu0 }
 0x170   :  { %v618_v40 = vpop.eup %617 }
 0x171   :  { %v253_v41 = vpack.c.bf16 %v618_v40, %v618_v40 }
 0x173   :  { %287 = vmatmul.mubr.bf16.vlgmr.msra.gmra.mxu1 %v253_v41  ;;  %v584_v41 = vld [vmem:[%s920_s4] ss:$0 sm:$0xff] }
 0x174   :  { %341 = vmatpush1.bf16.msra.mxu1 %v702_v4  ;;  %372 = vmatprep.mubr.bf16.mxu1 %v656_v0 }
 0x175   :  { %342 = vmatprep.subr.bf16.mxu1 %v704_v5 }
 0x178   :  { %343 = vmatpush1.bf16.msra.mxu1 %v712_v7 }
 0x179   :  { %344 = vmatprep.subr.bf16.mxu1 %v715_v8 }
 0x17c   :  { %345 = vmatpush1.bf16.msra.mxu1 %v723_v10 }
 0x17d   :  { %346 = vmatprep.subr.bf16.mxu1 %v726_v11 }
 0x180   :  { %347 = vmatpush1.bf16.msra.mxu1 %v731_v12 }
 0x181   :  { %348 = vmatprep.subr.bf16.mxu1 %v734_v13 }
 0x184   :  { %349 = vmatpush1.bf16.msra.mxu1 %v739_v14 }
 0x185   :  { %350 = vmatprep.subr.bf16.mxu1 %v742_v15 }
 0x188   :  { %351 = vmatpush1.bf16.msra.mxu1 %v747_v16 }
 0x189   :  { %352 = vmatprep.subr.bf16.mxu1 %v750_v17 }
 0x18c   :  { %353 = vmatpush1.bf16.msra.mxu1 %v755_v18 }
 0x18d   :  { %354 = vmatprep.subr.bf16.mxu1 %v758_v19 }
 0x190   :  { %355 = vmatpush1.bf16.msra.mxu1 %v763_v20 }
 0x191   :  { %426 = vmatprep.subr.bf16.mxu1 %v700_v3 }
 0x233   :  { %v288_v45 = vpop.f32.mrf.mxu1 }
 0x234   :  { %v294_v46 = vadd.f32 %v288_v45, %v107_v44 }
 0x235   :  { %v290_v47 = vpop.f32.mrf.mxu1 }
 0x236   :  { %619 = vtanh.f32 %v294_v46 }
 0x237   :  { %v291_v48 = vpop.f32.mrf.mxu1 }
 0x239   :  { %v292_v49 = vpop.f32.mrf.mxu1 }
 0x243   :  { %v620_v50 = vpop.eup %619 }
 0x244   :  { %v296_v51 = vpack.c.bf16 %v620_v50, %v620_v50 }
 0x246   :  { %330 = vmatmul.mubr.bf16.vlgmr.msra.gmra.mxu0 %v296_v51 }
 0x247   :  { %384 = vmatpush1.bf16.msra.mxu0 %v702_v4  ;;  %415 = vmatprep.mubr.bf16.mxu0 %v656_v0 }
 0x248   :  { %385 = vmatprep.subr.bf16.mxu0 %v704_v5 }
 0x24b   :  { %386 = vmatpush1.bf16.msra.mxu0 %v712_v7 }
 0x24c   :  { %387 = vmatprep.subr.bf16.mxu0 %v715_v8 }
 0x24f   :  { %388 = vmatpush1.bf16.msra.mxu0 %v723_v10 }
 0x250   :  { %389 = vmatprep.subr.bf16.mxu0 %v726_v11 }
 0x253   :  { %390 = vmatpush1.bf16.msra.mxu0 %v731_v12 }
 0x254   :  { %391 = vmatprep.subr.bf16.mxu0 %v734_v13 }
 0x257   :  { %392 = vmatpush1.bf16.msra.mxu0 %v739_v14 }
 0x258   :  { %393 = vmatprep.subr.bf16.mxu0 %v742_v15 }
 0x25b   :  { %394 = vmatpush1.bf16.msra.mxu0 %v747_v16 }
 0x25c   :  { %395 = vmatprep.subr.bf16.mxu0 %v750_v17 }
 0x25f   :  { %396 = vmatpush1.bf16.msra.mxu0 %v755_v18 }
 0x260   :  { %397 = vmatprep.subr.bf16.mxu0 %v758_v19 }
 0x263   :  { %398 = vmatpush1.bf16.msra.mxu0 %v763_v20 }
 0x264   :  { %469 = vmatprep.subr.bf16.mxu0 %v700_v3 }
 0x306   :  { %v331_v55 = vpop.f32.mrf.mxu0 }
 0x307   :  { %v337_v56 = vadd.f32 %v331_v55, %v108_v54 }
 0x308   :  { %v333_v57 = vpop.f32.mrf.mxu0 }
 0x309   :  { %621 = vtanh.f32 %v337_v56 }
 0x30a   :  { %v334_v58 = vpop.f32.mrf.mxu0 }
 0x30c   :  { %v335_v59 = vpop.f32.mrf.mxu0 }
 0x316   :  { %v622_v60 = vpop.eup %621 }
 0x317   :  { %v339_v61 = vpack.c.bf16 %v622_v60, %v622_v60 }
 0x319   :  { %373 = vmatmul.mubr.bf16.vlgmr.msra.gmra.mxu1 %v339_v61 }
 0x31a   :  { %427 = vmatpush1.bf16.msra.mxu1 %v702_v4  ;;  %458 = vmatprep.mubr.bf16.mxu1 %v656_v0 }
 0x31b   :  { %428 = vmatprep.subr.bf16.mxu1 %v704_v5 }
 0x31e   :  { %429 = vmatpush1.bf16.msra.mxu1 %v712_v7 }
 0x31f   :  { %430 = vmatprep.subr.bf16.mxu1 %v715_v8 }
 0x322   :  { %431 = vmatpush1.bf16.msra.mxu1 %v723_v10 }
 0x323   :  { %432 = vmatprep.subr.bf16.mxu1 %v726_v11 }
 0x326   :  { %433 = vmatpush1.bf16.msra.mxu1 %v731_v12 }
 0x327   :  { %434 = vmatprep.subr.bf16.mxu1 %v734_v13 }
 0x32a   :  { %435 = vmatpush1.bf16.msra.mxu1 %v739_v14 }
 0x32b   :  { %436 = vmatprep.subr.bf16.mxu1 %v742_v15 }
 0x32e   :  { %437 = vmatpush1.bf16.msra.mxu1 %v747_v16 }
 0x32f   :  { %438 = vmatprep.subr.bf16.mxu1 %v750_v17 }
 0x332   :  { %439 = vmatpush1.bf16.msra.mxu1 %v755_v18 }
 0x333   :  { %440 = vmatprep.subr.bf16.mxu1 %v758_v19 }
 0x336   :  { %441 = vmatpush1.bf16.msra.mxu1 %v763_v20 }
 0x337   :  { %512 = vmatprep.subr.bf16.mxu1 %v700_v3  ;;  %v73_v3 = vpop.permute.xlu1 %72 }
 0x338   :  { %v96_v27 = vmul.f32 %v775_v21, %v73_v3 }
 0x33a   :  { %v110_v28 = vadd.f32 %v780_v23, %v96_v27 }
 0x3d9   :  { %v374_v2 = vpop.f32.mrf.mxu1 }
 0x3da   :  { %v380_v6 = vadd.f32 %v374_v2, %v109_v1 }
 0x3db   :  { %v376_v9 = vpop.f32.mrf.mxu1 }
 0x3dc   :  { %623 = vtanh.f32 %v380_v6 }
 0x3dd   :  { %v377_v22 = vpop.f32.mrf.mxu1 }
 0x3df   :  { %v378_v24 = vpop.f32.mrf.mxu1 }
 0x3e9   :  { %v624_v25 = vpop.eup %623 }
 0x3ea   :  { %v382_v26 = vpack.c.bf16 %v624_v25, %v624_v25 }
 0x3ec   :  { %416 = vmatmul.mubr.bf16.vlgmr.msra.gmra.mxu0 %v382_v26 }
 0x3ed   :  { %470 = vmatpush1.bf16.msra.mxu0 %v702_v4  ;;  %501 = vmatprep.mubr.bf16.mxu0 %v656_v0 }
 0x3ee   :  { %471 = vmatprep.subr.bf16.mxu0 %v704_v5 }
 0x3f1   :  { %472 = vmatpush1.bf16.msra.mxu0 %v712_v7 }
 0x3f2   :  { %473 = vmatprep.subr.bf16.mxu0 %v715_v8 }
 0x3f5   :  { %474 = vmatpush1.bf16.msra.mxu0 %v723_v10 }
 0x3f6   :  { %475 = vmatprep.subr.bf16.mxu0 %v726_v11 }
 0x3f9   :  { %476 = vmatpush1.bf16.msra.mxu0 %v731_v12 }
 0x3fa   :  { %477 = vmatprep.subr.bf16.mxu0 %v734_v13 }
 0x3fd   :  { %478 = vmatpush1.bf16.msra.mxu0 %v739_v14 }
 0x3fe   :  { %479 = vmatprep.subr.bf16.mxu0 %v742_v15 }
 0x401   :  { %480 = vmatpush1.bf16.msra.mxu0 %v747_v16 }
 0x402   :  { %481 = vmatprep.subr.bf16.mxu0 %v750_v17 }
 0x405   :  { %482 = vmatpush1.bf16.msra.mxu0 %v755_v18 }
 0x406   :  { %483 = vmatprep.subr.bf16.mxu0 %v758_v19 }
 0x409   :  { %484 = vmatpush1.bf16.msra.mxu0 %v763_v20 }
 0x4ac   :  { %v417_v29 = vpop.f32.mrf.mxu0 }
 0x4ad   :  { %v423_v30 = vadd.f32 %v417_v29, %v110_v28 }
 0x4ae   :  { %v419_v31 = vpop.f32.mrf.mxu0 }
 0x4af   :  { %625 = vtanh.f32 %v423_v30 }
 0x4b0   :  { %v420_v32 = vpop.f32.mrf.mxu0 }
 0x4b2   :  { %v421_v33 = vpop.f32.mrf.mxu0 }
 0x4bc   :  { %v626_v34 = vpop.eup %625 }
 0x4bd   :  { %v425_v35 = vpack.c.bf16 %v626_v34, %v626_v34 }
 0x4bf   :  { %459 = vmatmul.mubr.bf16.vlgmr.msra.gmra.mxu1 %v425_v35 }
 0x4c0   :  { %513 = vmatpush1.bf16.msra.mxu1 %v702_v4  ;;  %544 = vmatprep.mubr.bf16.mxu1 %v656_v0  ;;  %v78_v0 = vpop.permute.xlu0 %77 }
 0x4c1   :  { %514 = vmatprep.subr.bf16.mxu1 %v704_v5  ;;  %v97_v4 = vmul.f32 %v775_v21, %v78_v0 }
 0x4c3   :  { %v111_v5 = vadd.f32 %v780_v23, %v97_v4 }
 0x4c4   :  { %515 = vmatpush1.bf16.msra.mxu1 %v712_v7 }
 0x4c5   :  { %516 = vmatprep.subr.bf16.mxu1 %v715_v8 }
 0x4c8   :  { %517 = vmatpush1.bf16.msra.mxu1 %v723_v10 }
 0x4c9   :  { %518 = vmatprep.subr.bf16.mxu1 %v726_v11 }
 0x4cc   :  { %519 = vmatpush1.bf16.msra.mxu1 %v731_v12 }
 0x4cd   :  { %520 = vmatprep.subr.bf16.mxu1 %v734_v13 }
 0x4d0   :  { %521 = vmatpush1.bf16.msra.mxu1 %v739_v14 }
 0x4d1   :  { %522 = vmatprep.subr.bf16.mxu1 %v742_v15  ;;  %v83_v15 = vpop.permute.xlu1 %82 }
 0x4d4   :  { %523 = vmatpush1.bf16.msra.mxu1 %v747_v16  ;;  %v98_v16 = vmul.f32 %v775_v21, %v83_v15 }
 0x4d5   :  { %524 = vmatprep.subr.bf16.mxu1 %v750_v17 }
 0x4d6   :  { %v112_v17 = vadd.f32 %v780_v23, %v98_v16 }
 0x4d8   :  { %525 = vmatpush1.bf16.msra.mxu1 %v755_v18 }
 0x4d9   :  { %526 = vmatprep.subr.bf16.mxu1 %v758_v19 }
 0x4dc   :  { %527 = vmatpush1.bf16.msra.mxu1 %v763_v20 }
 0x57f   :  { %v460_v7 = vpop.f32.mrf.mxu1 }
 0x580   :  { %v466_v8 = vadd.f32 %v460_v7, %v111_v5 }
 0x581   :  { %v462_v10 = vpop.f32.mrf.mxu1 }
 0x582   :  { %627 = vtanh.f32 %v466_v8 }
 0x583   :  { %v463_v11 = vpop.f32.mrf.mxu1 }
 0x585   :  { %v464_v12 = vpop.f32.mrf.mxu1 }
 0x58f   :  { %v628_v13 = vpop.eup %627 }
 0x590   :  { %v468_v14 = vpack.c.bf16 %v628_v13, %v628_v13 }
 0x592   :  { %502 = vmatmul.mubr.bf16.vlgmr.msra.gmra.mxu0 %v468_v14 }
 0x652   :  { %v503_v18 = vpop.f32.mrf.mxu0 }
 0x653   :  { %v509_v19 = vadd.f32 %v503_v18, %v112_v17 }
 0x654   :  { %v505_v20 = vpop.f32.mrf.mxu0 }
 0x655   :  { %629 = vtanh.f32 %v509_v19 }
 0x656   :  { %v506_v36 = vpop.f32.mrf.mxu0 }
 0x658   :  { %v507_v37 = vpop.f32.mrf.mxu0 }
 0x662   :  { %v630_v38 = vpop.eup %629 }
 0x663   :  { %v511_v39 = vpack.c.bf16 %v630_v38, %v630_v38 }
 0x665   :  { %545 = vmatmul.mubr.bf16.vlgmr.msra.gmra.mxu1 %v511_v39 }
 0x725   :  { %v546_v40 = vpop.f32.mrf.mxu1 }
 0x727   :  { %v547_v42 = vpop.f32.mrf.mxu1 }
 0x728   :  { %v559_v43 = vadd.f32 %v584_v41, %v547_v42 }
 0x729   :  { %v549_v44 = vpop.f32.mrf.mxu1 }
 0x72a   :  { %560 = vst [vmem:[%s921_s5] sm:$0xff] %v559_v43 }
 0x72b   :  { %v550_v21 = vpop.f32.mrf.mxu1 }
 0x72c   :  { %565 = vsyncpa [#allocation3], 1 }

</bundles_post_ra>
